<compile_context>
chip_gen: v5e
topology: v5e:2x2
jax: 0.10.0
libtpu: 0.0.40
codegen_flags: <defaults>
</compile_context>

<pallas_src>
import functools

import jax
import jax.numpy as jnp
from jax.experimental import pallas as pl
from jax.experimental.pallas import tpu as pltpu

EPS = 1e-5
MAX_TILE_ROWS = 1024        # rows per grid step; VMEM footprint ~1 MiB/tile,
                            # well under v7x's 32 MiB scoped default.
MATMUL_DTYPE = jnp.float32  # set to jnp.bfloat16 on v6e/v7x for MXU throughput


def _round_up(n, m):
    return ((n + m - 1) // m) * m


def _ln_normalize(h):
    """LayerNorm without affine params (those are folded into the next Linear)."""
    mu = jnp.mean(h, axis=-1, keepdims=True)
    d = h - mu
    var = jnp.mean(d * d, axis=-1, keepdims=True)
    return d * jax.lax.rsqrt(var + EPS)


def model_kernel(x_ref, w1, b1, w2, b2, w3, b3, a1_wt, a1_bt, out_ref):
    f32 = jnp.float32

    def mm(a, w_ref):
        w = w_ref[...]
        return jnp.dot(a.astype(w.dtype), w, preferred_element_type=f32)

    h = x_ref[...].astype(f32)

    h = _ln_normalize(h)                                  # LayerNorm(116)
    h = jnp.maximum(mm(h, w1) + b1[...], 0.0)             # Linear(116,64)+ReLU
    h = _ln_normalize(h)                                  # LayerNorm(64)
    h = jnp.maximum(mm(h, w2) + b2[...], 0.0)             # Linear(64,64)+ReLU
    h = _ln_normalize(h)                                  # LayerNorm(64)
    h = jnp.maximum(mm(h, w3) + b3[...], 0.0)             # Linear(64,64)+ReLU
    h = _ln_normalize(h)                                  # LayerNorm(64)

    # Head a1 evaluated transposed:  logits_t[c, n] = sum_d a1_wt[c, d] * h[n, d]
    # (classes on sublanes, batch rows on lanes -> lane-dense output store).
    a_wt = a1_wt[...]
    logits_t = jax.lax.dot_general(
        a_wt, h.astype(a_wt.dtype),
        dimension_numbers=(((1,), (1,)), ((), ())),       # contract the 64-dim
        preferred_element_type=f32,
    ) + a1_bt[...]                                        # (3, TB)

    # argmax over the 3 classes with torch's first-max tie-break semantics.
    l0 = logits_t[0:1, :]
    l1 = logits_t[1:2, :]
    l2 = logits_t[2:3, :]
    am = jnp.where((l0 >= l1) & (l0 >= l2), jnp.int32(0),
                   jnp.where(l1 >= l2, jnp.int32(1), jnp.int32(2)))  # (1, TB)

    out_ref[0] = am.astype(jnp.int32)                     # out block (1, 1, TB)


def _fold_params(p):
    """Fold each LayerNorm's affine params into the following Linear (exact)."""
    def fold(g, beta, w, c):
        wp = g.reshape(-1, 1) * w                         # (in, out)
        cp = beta.reshape(1, -1) @ w + c                  # (1, out)
        return wp.astype(MATMUL_DTYPE), cp.astype(jnp.float32)

    w1, b1 = fold(p["ln0_g"], p["ln0_b"], p["w1"], p["b1"])
    w2, b2 = fold(p["ln1_g"], p["ln1_b"], p["w2"], p["b2"])
    w3, b3 = fold(p["ln2_g"], p["ln2_b"], p["w3"], p["b3"])
    aw, ab = fold(p["ln3_g"], p["ln3_b"], p["a1_w"], p["a1_b"])
    # Head stored transposed for the lane-dense output path.
    return w1, b1, w2, b2, w3, b3, aw.T, ab.T             # (3,64), (3,1)


@functools.partial(jax.jit, static_argnames=("max_tile_rows",))
def torch_model_forward(x, params, *, max_tile_rows=MAX_TILE_ROWS):
    B, F = x.shape
    TB = min(max_tile_rows, _round_up(max(B, 1), 8))
    B_pad = _round_up(B, TB)
    num_tiles = B_pad // TB
    if B_pad != B:
        x = jnp.pad(x, ((0, B_pad - B), (0, 0)))

    w1, b1, w2, b2, w3, b3, a1_wt, a1_bt = _fold_params(params)

    def pinned(shape):
        # Constant block index -> Pallas keeps the buffer VMEM-resident and
        # does not re-DMA it across grid steps.
        return pl.BlockSpec(shape, lambda i, _n=len(shape): (0,) * _n)

    out = pl.pallas_call(
        model_kernel,
        grid=(num_tiles,),
        in_specs=[
            pl.BlockSpec((TB, F), lambda i: (i, 0)),      # x: fresh tile per step
            pinned(w1.shape), pinned(b1.shape),
            pinned(w2.shape), pinned(b2.shape),
            pinned(w3.shape), pinned(b3.shape),
            pinned(a1_wt.shape), pinned(a1_bt.shape),
        ],
        out_specs=pl.BlockSpec((1, 1, TB), lambda i: (i, 0, 0)),
        out_shape=jax.ShapeDtypeStruct((num_tiles, 1, TB), jnp.int32),
        compiler_params=pltpu.CompilerParams(
            dimension_semantics=("parallel",),            # 2x TC sharding on v7x
        ),
    )(x, w1, b1, w2, b2, w3, b3, a1_wt, a1_bt)

    # NOTE: torch argmax returns int64; int32 indices are equivalent here.
    return out.reshape(B_pad)[:B]


def init_params(key):
    """Deterministic parameter init (shapes match the torch module)."""
    ks = list(jax.random.split(key, 8))

    def lin(kw, kb, fan_in, fan_out):
        bound = 1.0 / jnp.sqrt(fan_in)
        w = jax.random.uniform(kw, (fan_in, fan_out), jnp.float32, -bound, bound)
        b = jax.random.uniform(kb, (1, fan_out), jnp.float32, -bound, bound)
        return w, b

    params = {}
    # LayerNorm params (torch default: weight=1, bias=0) kept as (1, N) rows.
    params["ln0_g"] = jnp.ones((1, 116), jnp.float32)
    params["ln0_b"] = jnp.zeros((1, 116), jnp.float32)
    params["w1"], params["b1"] = lin(ks[0], ks[1], 116, 64)
    params["ln1_g"] = jnp.ones((1, 64), jnp.float32)
    params["ln1_b"] = jnp.zeros((1, 64), jnp.float32)
    params["w2"], params["b2"] = lin(ks[2], ks[3], 64, 64)
    params["ln2_g"] = jnp.ones((1, 64), jnp.float32)
    params["ln2_b"] = jnp.zeros((1, 64), jnp.float32)
    params["w3"], params["b3"] = lin(ks[4], ks[5], 64, 64)
    params["ln3_g"] = jnp.ones((1, 64), jnp.float32)
    params["ln3_b"] = jnp.zeros((1, 64), jnp.float32)
    params["a1_w"], params["a1_b"] = lin(ks[6], ks[7], 64, 3)
    return params


if __name__ == "__main__":
    key = jax.random.PRNGKey(0)
    k_x, k_p = jax.random.split(key)
    params = init_params(k_p)

    # Pure-JAX reference of the same math (un-folded, full LayerNorm).
    def ref(x, p):
        def ln(h, g, b):
            mu = h.mean(-1, keepdims=True)
            var = ((h - mu) ** 2).mean(-1, keepdims=True)
            return (h - mu) / jnp.sqrt(var + EPS) * g + b
        h = ln(x, p["ln0_g"], p["ln0_b"])
        h = jnp.maximum(h @ p["w1"] + p["b1"], 0)
        h = ln(h, p["ln1_g"], p["ln1_b"])
        h = jnp.maximum(h @ p["w2"] + p["b2"], 0)
        h = ln(h, p["ln2_g"], p["ln2_b"])
        h = jnp.maximum(h @ p["w3"] + p["b3"], 0)
        h = ln(h, p["ln3_g"], p["ln3_b"])
        return jnp.argmax(h @ p["a1_w"] + p["a1_b"], axis=-1).astype(jnp.int32)

    # (batch, max_tile_rows): exercises single-tile, padded, and multi-tile grids.
    cases = [(8, MAX_TILE_ROWS), (13, MAX_TILE_ROWS), (40, 16)]
    ok = True
    for B, mtr in cases:
        x = jax.random.normal(jax.random.fold_in(k_x, B), (B, 116), jnp.float32)
        a1 = torch_model_forward(x, params, max_tile_rows=mtr)
        jax.block_until_ready(a1)
        ok = ok and bool(jnp.array_equal(a1, ref(x, params)))
    assert ok, "mismatch vs reference"
    print("KERNEL_OK")
</pallas_src>

<mosaic_0001>
module attributes {stable_mosaic.version = 11 : i64} {
  func.func @model_kernel(%arg0: i32, %arg1: memref<8x116xf32, #tpu.memory_space<vmem>>, %arg2: memref<116x64xf32, #tpu.memory_space<vmem>>, %arg3: memref<1x64xf32, #tpu.memory_space<vmem>>, %arg4: memref<64x64xf32, #tpu.memory_space<vmem>>, %arg5: memref<1x64xf32, #tpu.memory_space<vmem>>, %arg6: memref<64x64xf32, #tpu.memory_space<vmem>>, %arg7: memref<1x64xf32, #tpu.memory_space<vmem>>, %arg8: memref<3x64xf32, #tpu.memory_space<vmem>>, %arg9: memref<3x1xf32, #tpu.memory_space<vmem>>, %arg10: memref<1x1x8xi32, #tpu.memory_space<vmem>>) attributes {dimension_semantics = [#tpu.dimension_semantics<parallel>], iteration_bounds = array<i64: 1>, scalar_prefetch = 0 : i64, scratch_operands = 0 : i64, tpu.core_type = #tpu.core_type<tc>, window_params = [{transform_indices = @transform_0, window_bounds = array<i64: 8, 116>}, {pipeline_mode = #tpu.pipeline_mode<synchronous>, transform_indices = @transform_1, window_bounds = array<i64: 116, 64>}, {pipeline_mode = #tpu.pipeline_mode<synchronous>, transform_indices = @transform_2, window_bounds = array<i64: 1, 64>}, {pipeline_mode = #tpu.pipeline_mode<synchronous>, transform_indices = @transform_3, window_bounds = array<i64: 64, 64>}, {pipeline_mode = #tpu.pipeline_mode<synchronous>, transform_indices = @transform_4, window_bounds = array<i64: 1, 64>}, {pipeline_mode = #tpu.pipeline_mode<synchronous>, transform_indices = @transform_5, window_bounds = array<i64: 64, 64>}, {pipeline_mode = #tpu.pipeline_mode<synchronous>, transform_indices = @transform_6, window_bounds = array<i64: 1, 64>}, {pipeline_mode = #tpu.pipeline_mode<synchronous>, transform_indices = @transform_7, window_bounds = array<i64: 3, 64>}, {pipeline_mode = #tpu.pipeline_mode<synchronous>, transform_indices = @transform_8, window_bounds = array<i64: 3, 1>}, {transform_indices = @transform_9, window_bounds = array<i64: 1, 1, 8>}]} {
    %c0 = arith.constant 0 : index
    %c0_0 = arith.constant 0 : index
    %0 = vector.load %arg1[%c0, %c0_0] : memref<8x116xf32, #tpu.memory_space<vmem>>, vector<8x116xf32>
    %cst = arith.constant dense<0.000000e+00> : vector<8xf32>
    %1 = vector.multi_reduction <add>, %0, %cst [1] : vector<8x116xf32> to vector<8xf32>
    %2 = vector.shape_cast %1 : vector<8xf32> to vector<8x1xf32>
    %cst_1 = arith.constant 1.160000e+02 : f32
    %3 = vector.broadcast %cst_1 : f32 to vector<8x1xf32>
    %4 = arith.divf %2, %3 : vector<8x1xf32>
    %5 = vector.broadcast %4 : vector<8x1xf32> to vector<8x116xf32>
    %6 = arith.subf %0, %5 : vector<8x116xf32>
    %7 = arith.mulf %6, %6 : vector<8x116xf32>
    %cst_2 = arith.constant dense<0.000000e+00> : vector<8xf32>
    %8 = vector.multi_reduction <add>, %7, %cst_2 [1] : vector<8x116xf32> to vector<8xf32>
    %9 = vector.shape_cast %8 : vector<8xf32> to vector<8x1xf32>
    %cst_3 = arith.constant 1.160000e+02 : f32
    %10 = vector.broadcast %cst_3 : f32 to vector<8x1xf32>
    %11 = arith.divf %9, %10 : vector<8x1xf32>
    %cst_4 = arith.constant 9.99999974E-6 : f32
    %12 = vector.broadcast %cst_4 : f32 to vector<8x1xf32>
    %13 = arith.addf %11, %12 : vector<8x1xf32>
    %14 = math.rsqrt %13 : vector<8x1xf32>
    %15 = vector.broadcast %14 : vector<8x1xf32> to vector<8x116xf32>
    %16 = arith.mulf %6, %15 : vector<8x116xf32>
    %c0_5 = arith.constant 0 : index
    %c0_6 = arith.constant 0 : index
    %17 = vector.load %arg2[%c0_5, %c0_6] : memref<116x64xf32, #tpu.memory_space<vmem>>, vector<116x64xf32>
    %cst_7 = arith.constant dense<0.000000e+00> : vector<8x64xf32>
    %18 = tpu.matmul %16, %17, %cst_7 {dimension_numbers = #tpu.dot_dimension_numbers<[1], [0], [0], [1], [0, 0, 1, 1], [], []>} : vector<8x116xf32>, vector<116x64xf32>, vector<8x64xf32> -> vector<8x64xf32>
    %c0_8 = arith.constant 0 : index
    %c0_9 = arith.constant 0 : index
    %19 = vector.load %arg3[%c0_8, %c0_9] : memref<1x64xf32, #tpu.memory_space<vmem>>, vector<1x64xf32>
    %20 = vector.broadcast %19 : vector<1x64xf32> to vector<8x64xf32>
    %21 = arith.addf %18, %20 : vector<8x64xf32>
    %cst_10 = arith.constant 0.000000e+00 : f32
    %22 = vector.broadcast %cst_10 : f32 to vector<8x64xf32>
    %23 = arith.maximumf %21, %22 : vector<8x64xf32>
    %cst_11 = arith.constant dense<0.000000e+00> : vector<8xf32>
    %24 = vector.multi_reduction <add>, %23, %cst_11 [1] : vector<8x64xf32> to vector<8xf32>
    %25 = vector.shape_cast %24 : vector<8xf32> to vector<8x1xf32>
    %cst_12 = arith.constant 6.400000e+01 : f32
    %26 = vector.broadcast %cst_12 : f32 to vector<8x1xf32>
    %27 = arith.divf %25, %26 : vector<8x1xf32>
    %28 = vector.broadcast %27 : vector<8x1xf32> to vector<8x64xf32>
    %29 = arith.subf %23, %28 : vector<8x64xf32>
    %30 = arith.mulf %29, %29 : vector<8x64xf32>
    %cst_13 = arith.constant dense<0.000000e+00> : vector<8xf32>
    %31 = vector.multi_reduction <add>, %30, %cst_13 [1] : vector<8x64xf32> to vector<8xf32>
    %32 = vector.shape_cast %31 : vector<8xf32> to vector<8x1xf32>
    %cst_14 = arith.constant 6.400000e+01 : f32
    %33 = vector.broadcast %cst_14 : f32 to vector<8x1xf32>
    %34 = arith.divf %32, %33 : vector<8x1xf32>
    %cst_15 = arith.constant 9.99999974E-6 : f32
    %35 = vector.broadcast %cst_15 : f32 to vector<8x1xf32>
    %36 = arith.addf %34, %35 : vector<8x1xf32>
    %37 = math.rsqrt %36 : vector<8x1xf32>
    %38 = vector.broadcast %37 : vector<8x1xf32> to vector<8x64xf32>
    %39 = arith.mulf %29, %38 : vector<8x64xf32>
    %c0_16 = arith.constant 0 : index
    %c0_17 = arith.constant 0 : index
    %40 = vector.load %arg4[%c0_16, %c0_17] : memref<64x64xf32, #tpu.memory_space<vmem>>, vector<64x64xf32>
    %cst_18 = arith.constant dense<0.000000e+00> : vector<8x64xf32>
    %41 = tpu.matmul %39, %40, %cst_18 {dimension_numbers = #tpu.dot_dimension_numbers<[1], [0], [0], [1], [0, 0, 1, 1], [], []>} : vector<8x64xf32>, vector<64x64xf32>, vector<8x64xf32> -> vector<8x64xf32>
    %c0_19 = arith.constant 0 : index
    %c0_20 = arith.constant 0 : index
    %42 = vector.load %arg5[%c0_19, %c0_20] : memref<1x64xf32, #tpu.memory_space<vmem>>, vector<1x64xf32>
    %43 = vector.broadcast %42 : vector<1x64xf32> to vector<8x64xf32>
    %44 = arith.addf %41, %43 : vector<8x64xf32>
    %cst_21 = arith.constant 0.000000e+00 : f32
    %45 = vector.broadcast %cst_21 : f32 to vector<8x64xf32>
    %46 = arith.maximumf %44, %45 : vector<8x64xf32>
    %cst_22 = arith.constant dense<0.000000e+00> : vector<8xf32>
    %47 = vector.multi_reduction <add>, %46, %cst_22 [1] : vector<8x64xf32> to vector<8xf32>
    %48 = vector.shape_cast %47 : vector<8xf32> to vector<8x1xf32>
    %cst_23 = arith.constant 6.400000e+01 : f32
    %49 = vector.broadcast %cst_23 : f32 to vector<8x1xf32>
    %50 = arith.divf %48, %49 : vector<8x1xf32>
    %51 = vector.broadcast %50 : vector<8x1xf32> to vector<8x64xf32>
    %52 = arith.subf %46, %51 : vector<8x64xf32>
    %53 = arith.mulf %52, %52 : vector<8x64xf32>
    %cst_24 = arith.constant dense<0.000000e+00> : vector<8xf32>
    %54 = vector.multi_reduction <add>, %53, %cst_24 [1] : vector<8x64xf32> to vector<8xf32>
    %55 = vector.shape_cast %54 : vector<8xf32> to vector<8x1xf32>
    %cst_25 = arith.constant 6.400000e+01 : f32
    %56 = vector.broadcast %cst_25 : f32 to vector<8x1xf32>
    %57 = arith.divf %55, %56 : vector<8x1xf32>
    %cst_26 = arith.constant 9.99999974E-6 : f32
    %58 = vector.broadcast %cst_26 : f32 to vector<8x1xf32>
    %59 = arith.addf %57, %58 : vector<8x1xf32>
    %60 = math.rsqrt %59 : vector<8x1xf32>
    %61 = vector.broadcast %60 : vector<8x1xf32> to vector<8x64xf32>
    %62 = arith.mulf %52, %61 : vector<8x64xf32>
    %c0_27 = arith.constant 0 : index
    %c0_28 = arith.constant 0 : index
    %63 = vector.load %arg6[%c0_27, %c0_28] : memref<64x64xf32, #tpu.memory_space<vmem>>, vector<64x64xf32>
    %cst_29 = arith.constant dense<0.000000e+00> : vector<8x64xf32>
    %64 = tpu.matmul %62, %63, %cst_29 {dimension_numbers = #tpu.dot_dimension_numbers<[1], [0], [0], [1], [0, 0, 1, 1], [], []>} : vector<8x64xf32>, vector<64x64xf32>, vector<8x64xf32> -> vector<8x64xf32>
    %c0_30 = arith.constant 0 : index
    %c0_31 = arith.constant 0 : index
    %65 = vector.load %arg7[%c0_30, %c0_31] : memref<1x64xf32, #tpu.memory_space<vmem>>, vector<1x64xf32>
    %66 = vector.broadcast %65 : vector<1x64xf32> to vector<8x64xf32>
    %67 = arith.addf %64, %66 : vector<8x64xf32>
    %cst_32 = arith.constant 0.000000e+00 : f32
    %68 = vector.broadcast %cst_32 : f32 to vector<8x64xf32>
    %69 = arith.maximumf %67, %68 : vector<8x64xf32>
    %cst_33 = arith.constant dense<0.000000e+00> : vector<8xf32>
    %70 = vector.multi_reduction <add>, %69, %cst_33 [1] : vector<8x64xf32> to vector<8xf32>
    %71 = vector.shape_cast %70 : vector<8xf32> to vector<8x1xf32>
    %cst_34 = arith.constant 6.400000e+01 : f32
    %72 = vector.broadcast %cst_34 : f32 to vector<8x1xf32>
    %73 = arith.divf %71, %72 : vector<8x1xf32>
    %74 = vector.broadcast %73 : vector<8x1xf32> to vector<8x64xf32>
    %75 = arith.subf %69, %74 : vector<8x64xf32>
    %76 = arith.mulf %75, %75 : vector<8x64xf32>
    %cst_35 = arith.constant dense<0.000000e+00> : vector<8xf32>
    %77 = vector.multi_reduction <add>, %76, %cst_35 [1] : vector<8x64xf32> to vector<8xf32>
    %78 = vector.shape_cast %77 : vector<8xf32> to vector<8x1xf32>
    %cst_36 = arith.constant 6.400000e+01 : f32
    %79 = vector.broadcast %cst_36 : f32 to vector<8x1xf32>
    %80 = arith.divf %78, %79 : vector<8x1xf32>
    %cst_37 = arith.constant 9.99999974E-6 : f32
    %81 = vector.broadcast %cst_37 : f32 to vector<8x1xf32>
    %82 = arith.addf %80, %81 : vector<8x1xf32>
    %83 = math.rsqrt %82 : vector<8x1xf32>
    %84 = vector.broadcast %83 : vector<8x1xf32> to vector<8x64xf32>
    %85 = arith.mulf %75, %84 : vector<8x64xf32>
    %c0_38 = arith.constant 0 : index
    %c0_39 = arith.constant 0 : index
    %86 = vector.load %arg8[%c0_38, %c0_39] : memref<3x64xf32, #tpu.memory_space<vmem>>, vector<3x64xf32>
    %cst_40 = arith.constant dense<0.000000e+00> : vector<3x8xf32>
    %87 = tpu.matmul %86, %85, %cst_40 {dimension_numbers = #tpu.dot_dimension_numbers<[1], [1], [0], [0], [0, 0, 1, 0], [], []>} : vector<3x64xf32>, vector<8x64xf32>, vector<3x8xf32> -> vector<3x8xf32>
    %c0_41 = arith.constant 0 : index
    %c0_42 = arith.constant 0 : index
    %88 = vector.load %arg9[%c0_41, %c0_42] : memref<3x1xf32, #tpu.memory_space<vmem>>, vector<3x1xf32>
    %89 = vector.broadcast %88 : vector<3x1xf32> to vector<3x8xf32>
    %90 = arith.addf %87, %89 : vector<3x8xf32>
    %91 = vector.extract_strided_slice %90 {offsets = [0, 0], sizes = [1, 8], strides = [1, 1]} : vector<3x8xf32> to vector<1x8xf32>
    %92 = vector.extract_strided_slice %90 {offsets = [1, 0], sizes = [1, 8], strides = [1, 1]} : vector<3x8xf32> to vector<1x8xf32>
    %93 = vector.extract_strided_slice %90 {offsets = [2, 0], sizes = [1, 8], strides = [1, 1]} : vector<3x8xf32> to vector<1x8xf32>
    %94 = arith.cmpf oge, %91, %92 : vector<1x8xf32>
    %95 = arith.cmpf oge, %91, %93 : vector<1x8xf32>
    %96 = arith.andi %94, %95 : vector<1x8xi1>
    %97 = arith.cmpf oge, %92, %93 : vector<1x8xf32>
    %c1_i32 = arith.constant 1 : i32
    %c2_i32 = arith.constant 2 : i32
    %98 = vector.broadcast %c1_i32 : i32 to vector<1x8xi32>
    %99 = vector.broadcast %c2_i32 : i32 to vector<1x8xi32>
    %100 = arith.select %97, %98, %99 : vector<1x8xi1>, vector<1x8xi32>
    %c0_i32 = arith.constant 0 : i32
    %101 = vector.broadcast %c0_i32 : i32 to vector<1x8xi32>
    %102 = arith.select %96, %101, %100 : vector<1x8xi1>, vector<1x8xi32>
    %c0_43 = arith.constant 0 : index
    %c0_44 = arith.constant 0 : index
    %c0_45 = arith.constant 0 : index
    %103 = vector.load %arg10[%c0_43, %c0_44, %c0_45] : memref<1x1x8xi32, #tpu.memory_space<vmem>>, vector<1x1x8xi32>
    %104 = vector.shape_cast %103 : vector<1x1x8xi32> to vector<1x8xi32>
    %105 = vector.shape_cast %102 : vector<1x8xi32> to vector<1x1x8xi32>
    tpu.vector_store %arg10[%c0_43, %c0_44, %c0_45], %105 {strides = array<i32>} : memref<1x1x8xi32, #tpu.memory_space<vmem>>, vector<1x1x8xi32>,
    return
  }
  func.func @transform_0(%arg0: i32) -> (i32, i32) {
    %c0_i32 = arith.constant 0 : i32
    %c0_i32_0 = arith.constant 0 : i32
    return %arg0, %c0_i32 : i32, i32
  }
  func.func @transform_1(%arg0: i32) -> (i32, i32) {
    %c0_i32 = arith.constant 0 : i32
    %c0_i32_0 = arith.constant 0 : i32
    %c0_i32_1 = arith.constant 0 : i32
    return %c0_i32, %c0_i32_0 : i32, i32
  }
  func.func @transform_2(%arg0: i32) -> (i32, i32) {
    %c0_i32 = arith.constant 0 : i32
    %c0_i32_0 = arith.constant 0 : i32
    %c0_i32_1 = arith.constant 0 : i32
    return %c0_i32, %c0_i32_0 : i32, i32
  }
  func.func @transform_3(%arg0: i32) -> (i32, i32) {
    %c0_i32 = arith.constant 0 : i32
    %c0_i32_0 = arith.constant 0 : i32
    %c0_i32_1 = arith.constant 0 : i32
    return %c0_i32, %c0_i32_0 : i32, i32
  }
  func.func @transform_4(%arg0: i32) -> (i32, i32) {
    %c0_i32 = arith.constant 0 : i32
    %c0_i32_0 = arith.constant 0 : i32
    %c0_i32_1 = arith.constant 0 : i32
    return %c0_i32, %c0_i32_0 : i32, i32
  }
  func.func @transform_5(%arg0: i32) -> (i32, i32) {
    %c0_i32 = arith.constant 0 : i32
    %c0_i32_0 = arith.constant 0 : i32
    %c0_i32_1 = arith.constant 0 : i32
    return %c0_i32, %c0_i32_0 : i32, i32
  }
  func.func @transform_6(%arg0: i32) -> (i32, i32) {
    %c0_i32 = arith.constant 0 : i32
    %c0_i32_0 = arith.constant 0 : i32
    %c0_i32_1 = arith.constant 0 : i32
    return %c0_i32, %c0_i32_0 : i32, i32
  }
  func.func @transform_7(%arg0: i32) -> (i32, i32) {
    %c0_i32 = arith.constant 0 : i32
    %c0_i32_0 = arith.constant 0 : i32
    %c0_i32_1 = arith.constant 0 : i32
    return %c0_i32, %c0_i32_0 : i32, i32
  }
  func.func @transform_8(%arg0: i32) -> (i32, i32) {
    %c0_i32 = arith.constant 0 : i32
    %c0_i32_0 = arith.constant 0 : i32
    %c0_i32_1 = arith.constant 0 : i32
    return %c0_i32, %c0_i32_0 : i32, i32
  }
  func.func @transform_9(%arg0: i32) -> (i32, i32, i32) {
    %c0_i32 = arith.constant 0 : i32
    %c0_i32_0 = arith.constant 0 : i32
    %c0_i32_1 = arith.constant 0 : i32
    return %arg0, %c0_i32, %c0_i32_0 : i32, i32, i32
  }
}

</mosaic_0001>

<bundles_post_ra>
// kernel: torch_model_forward.1
= control target key start
LH: loop header
LB: loop body
LE: loop exit
PB: predicated region body
PF: predicated region fallthrough
CT: control target
= control target key end

     0   :  { %vm34_vm0 = vcmask 949248   ;;  %s563_s0 = inlined_call_operand.vmem [shape: f32[8,116], index: 0, kind: input, shape index: {}]   ;;  %s564_s1 = inlined_call_operand.vmem [shape: f32[116,64], index: 1, kind: input, shape index: {}]   ;;  %s565_s2 = inlined_call_operand.vmem [shape: f32[1,64], index: 2, kind: input, shape index: {}]   ;;  %s566_s3 = inlined_call_operand.vmem [shape: f32[64,64], index: 3, kind: input, shape index: {}]   ;;  %s567_s4 = inlined_call_operand.vmem [shape: f32[1,64], index: 4, kind: input, shape index: {}]   ;;  %s568_s5 = inlined_call_operand.vmem [shape: f32[64,64], index: 5, kind: input, shape index: {}]   ;;  %s569_s6 = inlined_call_operand.vmem [shape: f32[1,64], index: 6, kind: input, shape index: {}]   ;;  %s570_s7 = inlined_call_operand.vmem [shape: f32[3,64], index: 7, kind: input, shape index: {}]   ;;  %s571_s8 = inlined_call_operand.vmem [shape: f32[3,1], index: 8, kind: input, shape index: {}]   ;;  %s572_s9 = inlined_call_operand.hbm [shape: s32[1,1,8], index: 9, kind: output, shape index: {}]  }
   0x1   :  { %v33_v0 = vld [vmem:[%s563_s0] sm:$0xff] }
   0x2   :  { %v35_v1 = vsel %vm34_vm0, %v33_v0, 0.0 }
   0x3   :  { %36 = vadd.xlane.f32.xlu0 %v35_v1 }
   0x4   :  { %14 = vsyncpa [#allocation3], 0  ;;  %v373_v2 = vmov 116.0   ;;  %v78_v3 = vld [vmem:[%s564_s1 + $0x70] sm:$0xf]  ;;  %vm86_vm1 = vcmask 1043456  }
   0x5   :  { %335 = vrcp.f32 %v373_v2  ;;  %v77_v4 = vld [vmem:[%s564_s1 + $0x68] sm:$0xff]  ;;  %319 = vmatpush.msk.msra.mxu0 %vm86_vm1, %v78_v3  ;;  %v76_v5 = vld [vmem:[%s564_s1 + $0x60] sm:$0xff]  ;;  %v75_v17 = vld [vmem:[%s564_s1 + $0x58] sm:$0xff]  ;;  %vm111_vm6 = vcmask 523264   ;;  %v374_v45 = vmov 64.0   ;;  %s376_s29 = smov [#allocation2]  }
   0x6   :  { %v74_v18 = vld [vmem:[%s564_s1 + $0x50] sm:$0xff]  ;;  %v73_v19 = vld [vmem:[%s564_s1 + $0x48] sm:$0xff]  ;;  %v72_v20 = vld [vmem:[%s564_s1 + $0x40] sm:$0xff]  ;;  %s308_s30 = sshll.u32 %s376_s29, 4  ;;  %s310_s12 = sshll.u32 %s572_s9, 4  ;;  %s309_s30 = int_to_ptr.vmem [resolvable:$true] %s308_s30  ;;  %s311_s12 = int_to_ptr.hbm [resolvable:$true] %s310_s12 }
   0x7   :  { %92 = vmatpush.msra.mxu0 %v77_v4  ;;  %v71_v21 = vld [vmem:[%s564_s1 + $0x38] sm:$0xff]  ;;  %v70_v22 = vld [vmem:[%s564_s1 + $0x30] sm:$0xff]  ;;  %v69_v23 = vld [vmem:[%s564_s1 + $0x28] sm:$0xff] }
   0x8   :  { %v68_v24 = vld [vmem:[%s564_s1 + $0x20] sm:$0xff]  ;;  %v67_v25 = vld [vmem:[%s564_s1 + $0x18] sm:$0xff]  ;;  %v66_v26 = vld [vmem:[%s564_s1 + $0x10] sm:$0xff] }
   0x9   :  { %93 = vmatpush.msra.mxu0 %v76_v5  ;;  %v65_v27 = vld [vmem:[%s564_s1 + $0x8] sm:$0xff]  ;;  %v64_v28 = vld [vmem:[%s564_s1] sm:$0xff]  ;;  %v148_v57 = vld [vmem:[%s566_s3 + $0x38] sm:$0xff] }
   0xa   :  { %v332_v40 = vld [vmem:[%s565_s2] ss:$0 sm:$0xff]  ;;  %164 = vmatpush.msra.mxu1 %v148_v57  ;;  %v147_v58 = vld [vmem:[%s566_s3 + $0x30] sm:$0xff]  ;;  %v146_v59 = vld [vmem:[%s566_s3 + $0x28] sm:$0xff] }
   0xb   :  { %v336_v6 = vpop.eup %335  ;;  %94 = vmatpush.msra.mxu0 %v75_v17  ;;  %v145_v60 = vld [vmem:[%s566_s3 + $0x20] sm:$0xff]  ;;  %v144_v61 = vld [vmem:[%s566_s3 + $0x18] sm:$0xff]  ;;  %v143_v62 = vld [vmem:[%s566_s3 + $0x10] sm:$0xff] }
   0xc   :  { %v39_v7 = vmul.f32 116.0, %v336_v6  ;;  %vm43_vm2 = vweird.f32 %v336_v6  ;;  %165 = vmatpush.msra.mxu1 %v147_v58  ;;  %v142_v63 = vld [vmem:[%s566_s3 + $0x8] sm:$0xff] }
   0xd   :  { %95 = vmatpush.msra.mxu0 %v74_v18 }
   0xe   :  { %v40_v8 = vsub.f32 1.0, %v39_v7  ;;  %166 = vmatpush.msra.mxu1 %v146_v59 }
   0xf   :  { %96 = vmatpush.msra.mxu0 %v73_v19 }
  0x10   :  { %v41_v9 = vmul.f32 %v336_v6, %v40_v8  ;;  %167 = vmatpush.msra.mxu1 %v145_v60 }
  0x11   :  { %97 = vmatpush.msra.mxu0 %v72_v20 }
  0x12   :  { %v42_v10 = vadd.f32 %v336_v6, %v41_v9  ;;  %168 = vmatpush.msra.mxu1 %v144_v61 }
  0x13   :  { %98 = vmatpush.msra.mxu0 %v71_v21 }
  0x14   :  { %v44_v11 = vsel %vm43_vm2, %v336_v6, %v42_v10  ;;  %169 = vmatpush.msra.mxu1 %v143_v62 }
  0x15   :  { %99 = vmatpush.msra.mxu0 %v70_v22  ;;  %v206_v22 = vld [vmem:[%s568_s5 + $0x38] sm:$0xff] }
  0x16   :  { %170 = vmatpush.msra.mxu1 %v142_v63  ;;  %222 = vmatpush.msra.mxu2 %v206_v22 }
  0x17   :  { %100 = vmatpush.msra.mxu0 %v69_v23  ;;  %v205_v23 = vld [vmem:[%s568_s5 + $0x30] sm:$0xff] }
  0x18   :  { %223 = vmatpush.msra.mxu2 %v205_v23 }
  0x19   :  { %101 = vmatpush.msra.mxu0 %v68_v24  ;;  %v204_v24 = vld [vmem:[%s568_s5 + $0x28] sm:$0xff] }
  0x1a   :  { %224 = vmatpush.msra.mxu2 %v204_v24 }
  0x1b   :  { %102 = vmatpush.msra.mxu0 %v67_v25  ;;  %v203_v25 = vld [vmem:[%s568_s5 + $0x20] sm:$0xff] }
  0x1c   :  { %225 = vmatpush.msra.mxu2 %v203_v25 }
  0x1d   :  { %103 = vmatpush.msra.mxu0 %v66_v26  ;;  %v202_v26 = vld [vmem:[%s568_s5 + $0x18] sm:$0xff] }
  0x1e   :  { %226 = vmatpush.msra.mxu2 %v202_v26 }
  0x1f   :  { %104 = vmatpush.msra.mxu0 %v65_v27  ;;  %v201_v27 = vld [vmem:[%s568_s5 + $0x10] sm:$0xff] }
  0x20   :  { %227 = vmatpush.msra.mxu2 %v201_v27 }
  0x21   :  { %105 = vmatpush.msra.mxu0 %v64_v28  ;;  %v200_v28 = vld [vmem:[%s568_s5 + $0x8] sm:$0xff] }
  0x22   :  { %228 = vmatpush.msra.mxu2 %v200_v28 }
  0x76   :  { %v37_v12 = vpop.xlane.xlu0 %36 }
  0x77   :  { %v45_v13 = vmul.f32 %v44_v11, %v37_v12  ;;  %v333_v12 = vld [vmem:[%s567_s4] ss:$0 sm:$0xff] }
  0x79   :  { %v46_v14 = vsub.f32 %v33_v0, %v45_v13  ;;  %v141_v0 = vld [vmem:[%s566_s3] sm:$0xff] }
  0x7a   :  { %171 = vmatpush.msra.mxu1 %v141_v0 }
  0x7b   :  { %v47_v15 = vmul.f32 %v46_v14, %v46_v14 }
  0x7d   :  { %v48_v16 = vsel %vm34_vm0, %v47_v15, 0.0 }
  0x7e   :  { %49 = vadd.xlane.f32.xlu0 %v48_v16 }
  0xf1   :  { %v50_v29 = vpop.xlane.xlu0 %49 }
  0xf2   :  { %v51_v30 = vmul.f32 %v50_v29, %v44_v11  ;;  %v199_v29 = vld [vmem:[%s568_s5] sm:$0xff] }
  0xf3   :  { %229 = vmatpush.msra.mxu2 %v199_v29 }
  0xf4   :  { %v52_v31 = vadd.f32 1e-05, %v51_v30 }
  0xf6   :  { %337 = vrsqrt.f32 %v52_v31  ;;  %vm59_vm4 = vweird.f32 %v52_v31 }
  0xf7   :  { %339 = vrcp.f32 %v374_v45 }
  0xfc   :  { %v338_v32 = vpop.eup %337 }
  0xfd   :  { %v54_v33 = vmul.f32 %v338_v32, %v52_v31  ;;  %vm60_vm3 = vweird.f32 %v338_v32  ;;  %v340_v46 = vpop.eup %339 }
  0xfe   :  { %vm61_vm5 = vmor %vm59_vm4, %vm60_vm3  ;;  %v116_v47 = vmul.f32 64.0, %v340_v46  ;;  %vm120_vm7 = vweird.f32 %v340_v46  ;;  %vm301_vm3 = vcmask 57344  }
  0xff   :  { %v55_v34 = vmul.f32 %v338_v32, %v54_v33 }
 0x100   :  { %v117_v48 = vsub.f32 1.0, %v116_v47 }
 0x101   :  { %v56_v35 = vmul.f32 0.5, %v55_v34 }
 0x102   :  { %v118_v49 = vmul.f32 %v340_v46, %v117_v48 }
 0x103   :  { %v57_v36 = vsub.f32 1.5, %v56_v35 }
 0x104   :  { %v119_v50 = vadd.f32 %v340_v46, %v118_v49 }
 0x105   :  { %v58_v37 = vmul.f32 %v338_v32, %v57_v36 }
 0x106   :  { %v483_v51 = vsel %vm120_vm7, %v340_v46, %v119_v50 }
 0x107   :  { %v62_v38 = vsel %vm61_vm5, %v338_v32, %v58_v37 }
 0x108   :  { %v63_v39 = vmul.f32 %v62_v38, %v46_v14 }
 0x10a   :  { %320 = vmatmul.msk.f32.vlgmr.msra.gmra.mxu0 %vm34_vm0, %v63_v39 }
 0x187   :  { %v107_v41 = vpop.f32.mrf.mxu0 }
 0x188   :  { %v108_v42 = vadd.f32 %v332_v40, %v107_v41  ;;  %v334_v41 = vld [vmem:[%s569_s6] ss:$0 sm:$0xff] }
 0x18a   :  { %v110_v43 = vmax.f32 %v108_v42, 0.0 }
 0x18c   :  { %v112_v44 = vsel %vm111_vm6, %v110_v43, 0.0 }
 0x18d   :  { %113 = vadd.xlane.f32.xlu1 %v112_v44 }
 0x200   :  { %v114_v52 = vpop.xlane.xlu1 %113 }
 0x201   :  { %v122_v53 = vmul.f32 %v483_v51, %v114_v52  ;;  %v258_v52 = vld [vmem:[%s571_s8] sm:$0x7] }
 0x203   :  { %v123_v54 = vsub.f32 %v110_v43, %v122_v53  ;;  %v375_v53 = vmov 0  }
 0x204   :  { %330 = vset.pattern.permute.xlu2 %v375_v53  ;;  %331 = vset.pattern.permute.xlu0 %v375_v53 }
 0x205   :  { %v124_v55 = vmul.f32 %v123_v54, %v123_v54 }
 0x207   :  { %v125_v56 = vsel %vm111_vm6, %v124_v55, 0.0 }
 0x208   :  { %126 = vadd.xlane.f32.xlu1 %v125_v56 }
 0x27b   :  { %v127_v1 = vpop.xlane.xlu1 %126 }
 0x27c   :  { %v128_v2 = vmul.f32 %v127_v1, %v483_v51  ;;  %v257_v1 = vld [vmem:[%s570_s7] sm:$0x7] }
 0x27e   :  { %v129_v3 = vadd.f32 1e-05, %v128_v2 }
 0x280   :  { %341 = vrsqrt.f32 %v129_v3  ;;  %vm136_vm9 = vweird.f32 %v129_v3 }
 0x286   :  { %v342_v4 = vpop.eup %341 }
 0x287   :  { %v131_v5 = vmul.f32 %v342_v4, %v129_v3  ;;  %vm137_vm8 = vweird.f32 %v342_v4 }
 0x288   :  { %vm138_vm10 = vmor %vm136_vm9, %vm137_vm8 }
 0x289   :  { %v132_v6 = vmul.f32 %v342_v4, %v131_v5 }
 0x28b   :  { %v133_v7 = vmul.f32 0.5, %v132_v6  ;;  %v377_v6 = vmov 2  }
 0x28d   :  { %v134_v8 = vsub.f32 1.5, %v133_v7 }
 0x28f   :  { %v135_v9 = vmul.f32 %v342_v4, %v134_v8 }
 0x291   :  { %v139_v10 = vsel %vm138_vm10, %v342_v4, %v135_v9 }
 0x292   :  { %v140_v11 = vmul.f32 %v139_v10, %v123_v54 }
 0x294   :  { %321 = vmatmul.msk.f32.vlgmr.msra.gmra.mxu1 %vm111_vm6, %v140_v11 }
 0x311   :  { %v173_v13 = vpop.f32.mrf.mxu1 }
 0x312   :  { %v174_v14 = vadd.f32 %v333_v12, %v173_v13 }
 0x314   :  { %v176_v15 = vmax.f32 %v174_v14, 0.0 }
 0x316   :  { %v177_v16 = vsel %vm111_vm6, %v176_v15, 0.0 }
 0x317   :  { %178 = vadd.xlane.f32.xlu2 %v177_v16 }
 0x38a   :  { %v179_v17 = vpop.xlane.xlu2 %178 }
 0x38b   :  { %v180_v18 = vmul.f32 %v179_v17, %v483_v51 }
 0x38d   :  { %v181_v19 = vsub.f32 %v176_v15, %v180_v18 }
 0x38f   :  { %v182_v20 = vmul.f32 %v181_v19, %v181_v19 }
 0x391   :  { %v183_v21 = vsel %vm111_vm6, %v182_v20, 0.0 }
 0x392   :  { %184 = vadd.xlane.f32.xlu2 %v183_v21 }
 0x3aa   :  { %261 = vperm.xlu2 %330, %v258_v52  }
 0x405   :  { %v185_v30 = vpop.xlane.xlu2 %184 }
 0x406   :  { %v186_v31 = vmul.f32 %v185_v30, %v483_v51 }
 0x408   :  { %v187_v32 = vadd.f32 1e-05, %v186_v31 }
 0x40a   :  { %343 = vrsqrt.f32 %v187_v32  ;;  %vm194_vm12 = vweird.f32 %v187_v32 }
 0x410   :  { %v344_v33 = vpop.eup %343 }
 0x411   :  { %v189_v34 = vmul.f32 %v344_v33, %v187_v32  ;;  %vm195_vm11 = vweird.f32 %v344_v33 }
 0x412   :  { %vm196_vm13 = vmor %vm194_vm12, %vm195_vm11 }
 0x413   :  { %v190_v35 = vmul.f32 %v344_v33, %v189_v34 }
 0x415   :  { %v191_v36 = vmul.f32 0.5, %v190_v35 }
 0x417   :  { %v192_v37 = vsub.f32 1.5, %v191_v36 }
 0x419   :  { %v193_v38 = vmul.f32 %v344_v33, %v192_v37 }
 0x41b   :  { %v197_v39 = vsel %vm196_vm13, %v344_v33, %v193_v38 }
 0x41c   :  { %v198_v40 = vmul.f32 %v197_v39, %v181_v19 }
 0x41e   :  { %322 = vmatmul.msk.f32.vlgmr.msra.gmra.mxu2 %vm111_vm6, %v198_v40 }
 0x4a1   :  { %v231_v42 = vpop.f32.mrf.mxu2 }
 0x4a2   :  { %v232_v43 = vadd.f32 %v334_v41, %v231_v42 }
 0x4a4   :  { %v234_v44 = vmax.f32 %v232_v43, 0.0 }
 0x4a6   :  { %v235_v45 = vsel %vm111_vm6, %v234_v44, 0.0 }
 0x4a7   :  { %236 = vadd.xlane.f32.xlu0 %v235_v45 }
 0x51a   :  { %v237_v46 = vpop.xlane.xlu0 %236 }
 0x51b   :  { %v238_v47 = vmul.f32 %v237_v46, %v483_v51 }
 0x51d   :  { %v239_v48 = vsub.f32 %v234_v44, %v238_v47 }
 0x51f   :  { %v240_v49 = vmul.f32 %v239_v48, %v239_v48 }
 0x521   :  { %v241_v50 = vsel %vm111_vm6, %v240_v49, 0.0 }
 0x522   :  { %242 = vadd.xlane.f32.xlu1 %v241_v50 }
 0x595   :  { %v243_v54 = vpop.xlane.xlu1 %242 }
 0x596   :  { %v244_v55 = vmul.f32 %v243_v54, %v483_v51  ;;  %v262_v51 = vpop.permute.xlu2 %261 }
 0x598   :  { %v245_v56 = vadd.f32 1e-05, %v244_v55 }
 0x59a   :  { %345 = vrsqrt.f32 %v245_v56  ;;  %vm252_vm15 = vweird.f32 %v245_v56 }
 0x5a0   :  { %v346_v57 = vpop.eup %345 }
 0x5a1   :  { %v247_v58 = vmul.f32 %v346_v57, %v245_v56  ;;  %vm253_vm14 = vweird.f32 %v346_v57 }
 0x5a2   :  { %vm254_vm0 = vmor %vm252_vm15, %vm253_vm14 }
 0x5a3   :  { %v248_v59 = vmul.f32 %v346_v57, %v247_v58 }
 0x5a5   :  { %v249_v60 = vmul.f32 0.5, %v248_v59 }
 0x5a7   :  { %v250_v61 = vsub.f32 1.5, %v249_v60 }
 0x5a9   :  { %v251_v62 = vmul.f32 %v346_v57, %v250_v61 }
 0x5ab   :  { %v255_v63 = vsel %vm254_vm0, %v346_v57, %v251_v62 }
 0x5ac   :  { %v256_v0 = vmul.f32 %v255_v63, %v239_v48 }
 0x5ae   :  { %323 = vmatpush.xpose.msk.msra.mxu3 %vm111_vm6, %v256_v0 }
 0x5b1   :  { %324 = vmatmul.msk.f32.vlgmr.msra.gmra.mxu3 %vm111_vm6, %v257_v1 }
 0x634   :  { %v287_v2 = vpop.f32.mrf.mxu3 }
 0x635   :  { %v288_v3 = vadd.f32 %v287_v2, %v262_v51 }
 0x637   :  { %v291_v4 = vrot.slane %v288_v3, 1  ;;  %v294_v5 = vrot.slane %v288_v3, 2 }
 0x639   :  { %vm293_vm1 = vcmp.ge.f32.partialorder %v288_v3, %v291_v4  ;;  %vm296_vm2 = vcmp.ge.f32.partialorder %v288_v3, %v294_v5 }
 0x63a   :  { %v298_v7 = vsel %vm293_vm1, 1, %v377_v6  ;;  %vm297_vm4 = vmand %vm293_vm1, %vm296_vm2 }
 0x63b   :  { %v299_v8 = vrot.slane %v298_v7, 1 }
 0x63d   :  { %v300_v9 = vsel %vm297_vm4, 0, %v299_v8 }
 0x63e   :  { %302 = vst.msk [vmem:[#allocation2] sm:$0x1] %vm301_vm3, %v300_v9 }
 0x63f   :  { %313 = dma.vmem_to_hbm [thread:$0]  %s309_s30, 16, %s311_s12, [#allocation3]  }
 0x640   :  { %371 = dma.done.wait [#allocation3], 16  }
 0x641   :  { %372 = vsyncadd [#allocation3], 4294967280 }
 0x642   :  { %318 = vsyncpa [#allocation3], 1 }

</bundles_post_ra>
